<compile_context>
chip_gen: v7x
topology: tpu7x:2x2x1
jax: 0.10.0
libtpu: 0.0.40
codegen_flags: <defaults>
</compile_context>

<pallas_src>
import functools

import jax
import jax.numpy as jnp
from jax.experimental import pallas as pl
from jax.experimental.pallas import tpu as pltpu

EPS2 = 1e-12


def _vn_linear_leaky_relu_kernel(x_ref, w_ref, o_ref, *, negative_slope, c_out):
    # x_ref : (1, 3, C_in, TN)   w_ref : (2*C_out, C_in)   o_ref : (1, 3, C_out, TN)
    w = w_ref[...]
    ns = negative_slope

    # One fused MXU pass per vector component: rows [0:C_out) -> p, [C_out:) -> d.
    pd0 = jnp.dot(w, x_ref[0, 0], preferred_element_type=jnp.float32)  # (2*C_out, TN)
    pd1 = jnp.dot(w, x_ref[0, 1], preferred_element_type=jnp.float32)
    pd2 = jnp.dot(w, x_ref[0, 2], preferred_element_type=jnp.float32)

    p0, d0 = pd0[:c_out], pd0[c_out:]
    p1, d1 = pd1[:c_out], pd1[c_out:]
    p2, d2 = pd2[:c_out], pd2[c_out:]

    dot = p0 * d0 + p1 * d1 + p2 * d2          # sum over the 3-vector axis
    dns = d0 * d0 + d1 * d1 + d2 * d2
    inv = pl.reciprocal(dns + EPS2, approx=False)   # EUP reciprocal, VPU stays free
    # out_k = p_k                      if dot >= 0
    #       = p_k - (1-ns)*scale*d_k   otherwise   (scale = dot/(dns+EPS2))
    coeff = jnp.where(dot >= 0, 0.0, (1.0 - ns) * (dot * inv))

    o_ref[0, 0] = (p0 - coeff * d0).astype(o_ref.dtype)
    o_ref[0, 1] = (p1 - coeff * d1).astype(o_ref.dtype)
    o_ref[0, 2] = (p2 - coeff * d2).astype(o_ref.dtype)


def vn_linear_leaky_relu(x, w_feat, w_dir, negative_slope=0.2, tile_n=1024):
    """x: [B, C_in, 3, N] float32; weights: [C_out, C_in] (nn.Linear layout)."""
    B, C_in, K, N = x.shape
    assert K == 3
    C_out, C_in_w = w_feat.shape
    assert C_in_w == C_in and w_dir.shape == (C_out, C_in)
    assert tile_n % 128 == 0

    # Pad C_out to a sublane multiple so the fused p/d split stays aligned and
    # output stores are unmasked. Padded rows are all-zero -> out rows are 0,
    # sliced off afterwards.
    C_out_p = ((C_out + 7) // 8) * 8
    if C_out_p != C_out:
        pad_rows = ((0, C_out_p - C_out), (0, 0))
        w_feat_p = jnp.pad(w_feat, pad_rows)
        w_dir_p = jnp.pad(w_dir, pad_rows)
    else:
        w_feat_p, w_dir_p = w_feat, w_dir

    # Lane-aligned tiling of the point dimension.
    n_pad_128 = pl.cdiv(N, 128) * 128
    TN = min(tile_n, n_pad_128)
    N_pad = pl.cdiv(N, TN) * TN
    n_tiles = N_pad // TN

    # Layout: [B, C_in, 3, N] -> [B, 3, C_in, N_pad] (lane-dense per component).
    x_t = jnp.transpose(x, (0, 2, 1, 3))
    if N_pad != N:
        # Zero padding: p=d=0 there -> dot=0 -> coeff=0 -> out=0 (finite, sliced off).
        x_t = jnp.pad(x_t, ((0, 0), (0, 0), (0, 0), (0, N_pad - N)))

    # Fuse the two channel-mixing weights into one (2*C_out_p, C_in) matrix.
    w_fd = jnp.concatenate([w_feat_p, w_dir_p], axis=0)

    kern = functools.partial(_vn_linear_leaky_relu_kernel,
                             negative_slope=negative_slope, c_out=C_out_p)

    cost = pl.CostEstimate(
        flops=2 * B * 3 * N_pad * C_in * (2 * C_out_p),
        transcendentals=0,
        bytes_accessed=4 * (B * 3 * N_pad * C_in
                            + B * 3 * N_pad * C_out_p
                            + 2 * C_out_p * C_in),
    )

    out_t = pl.pallas_call(
        kern,
        out_shape=jax.ShapeDtypeStruct((B, 3, C_out_p, N_pad), x.dtype),
        grid_spec=pltpu.PrefetchScalarGridSpec(
            num_scalar_prefetch=0,
            grid=(B, n_tiles),
            in_specs=[
                pl.BlockSpec((1, 3, C_in, TN), lambda b, n: (b, 0, 0, n)),
                pl.BlockSpec((2 * C_out_p, C_in), lambda b, n: (0, 0)),
            ],
            out_specs=pl.BlockSpec((1, 3, C_out_p, TN), lambda b, n: (b, 0, 0, n)),
        ),
        compiler_params=pltpu.CompilerParams(
            dimension_semantics=("parallel", "parallel")),
        cost_estimate=cost,
    )(x_t, w_fd)

    # [B, 3, C_out_p, N_pad] -> [B, C_out, 3, N]
    return jnp.transpose(out_t[:, :, :C_out, :N], (0, 2, 1, 3))


def _reference(x, w_feat, w_dir, negative_slope=0.2):
    """Pure-JAX reference mirroring the PyTorch forward (bn=False path)."""
    p = jnp.einsum('oc,bckn->bokn', w_feat, x)
    d = jnp.einsum('oc,bckn->bokn', w_dir, x)
    dot = jnp.sum(p * d, axis=2, keepdims=True)
    mask = (dot >= 0).astype(x.dtype)
    dns = jnp.sum(d * d, axis=2, keepdims=True)
    return negative_slope * p + (1.0 - negative_slope) * (
        mask * p + (1.0 - mask) * (p - dot / (dns + EPS2) * d))


# TODO(synk): VNBatchNorm branch (bn=True) is not implemented; this kernel covers
# the default bn=False, apply_leaky_relu=True, share_nonlinearity=False path.

if __name__ == "__main__":
    B, C_in, C_out, N = 2, 4, 8, 16
    negative_slope = 0.2

    key = jax.random.PRNGKey(0)
    kx, kf, kd = jax.random.split(key, 3)

    x = jax.random.normal(kx, (B, C_in, 3, N), dtype=jnp.float32)
    # nn.Linear-like init: U(-1/sqrt(C_in), 1/sqrt(C_in)), weight (out, in), bias=False.
    bound = 1.0 / (C_in ** 0.5)
    w_feat = jax.random.uniform(kf, (C_out, C_in), jnp.float32, -bound, bound)
    w_dir = jax.random.uniform(kd, (C_out, C_in), jnp.float32, -bound, bound)

    out = vn_linear_leaky_relu(x, w_feat, w_dir, negative_slope)
    out = jax.block_until_ready(out)

    ref = _reference(x, w_feat, w_dir, negative_slope)
    assert out.shape == (B, C_out, 3, N)
    assert jnp.allclose(out, ref, atol=1e-5, rtol=1e-5), "mismatch vs reference"

    print("KERNEL_OK")
</pallas_src>

<mosaic_0001>
module attributes {stable_mosaic.version = 11 : i64} {
  func.func @_vn_linear_leaky_relu_kernel(%arg0: i32, %arg1: i32, %arg2: memref<1x3x4x128xf32, #tpu.memory_space<vmem>>, %arg3: memref<16x4xf32, #tpu.memory_space<vmem>>, %arg4: memref<1x3x8x128xf32, #tpu.memory_space<vmem>>) attributes {dimension_semantics = [#tpu.dimension_semantics<parallel>, #tpu.dimension_semantics<parallel>], iteration_bounds = array<i64: 2, 1>, scalar_prefetch = 0 : i64, scratch_operands = 0 : i64, tpu.core_type = #tpu.core_type<tc>, window_params = [{transform_indices = @transform_0, window_bounds = array<i64: 1, 3, 4, 128>}, {pipeline_mode = #tpu.pipeline_mode<synchronous>, transform_indices = @transform_1, window_bounds = array<i64: 16, 4>}, {transform_indices = @transform_2, window_bounds = array<i64: 1, 3, 8, 128>}]} {
    %c0 = arith.constant 0 : index
    %c0_0 = arith.constant 0 : index
    %0 = vector.load %arg3[%c0, %c0_0] : memref<16x4xf32, #tpu.memory_space<vmem>>, vector<16x4xf32>
    %c0_1 = arith.constant 0 : index
    %c0_2 = arith.constant 0 : index
    %c0_3 = arith.constant 0 : index
    %c0_4 = arith.constant 0 : index
    %1 = vector.load %arg2[%c0_1, %c0_2, %c0_3, %c0_4] : memref<1x3x4x128xf32, #tpu.memory_space<vmem>>, vector<1x1x4x128xf32>
    %2 = vector.shape_cast %1 : vector<1x1x4x128xf32> to vector<4x128xf32>
    %cst = arith.constant dense<0.000000e+00> : vector<16x128xf32>
    %3 = tpu.matmul %0, %2, %cst {dimension_numbers = #tpu.dot_dimension_numbers<[1], [0], [0], [1], [0, 0, 1, 1], [], []>} : vector<16x4xf32>, vector<4x128xf32>, vector<16x128xf32> -> vector<16x128xf32>
    %c0_5 = arith.constant 0 : index
    %c1 = arith.constant 1 : index
    %c0_6 = arith.constant 0 : index
    %c0_7 = arith.constant 0 : index
    %4 = vector.load %arg2[%c0_5, %c1, %c0_6, %c0_7] : memref<1x3x4x128xf32, #tpu.memory_space<vmem>>, vector<1x1x4x128xf32>
    %5 = vector.shape_cast %4 : vector<1x1x4x128xf32> to vector<4x128xf32>
    %cst_8 = arith.constant dense<0.000000e+00> : vector<16x128xf32>
    %6 = tpu.matmul %0, %5, %cst_8 {dimension_numbers = #tpu.dot_dimension_numbers<[1], [0], [0], [1], [0, 0, 1, 1], [], []>} : vector<16x4xf32>, vector<4x128xf32>, vector<16x128xf32> -> vector<16x128xf32>
    %c0_9 = arith.constant 0 : index
    %c2 = arith.constant 2 : index
    %c0_10 = arith.constant 0 : index
    %c0_11 = arith.constant 0 : index
    %7 = vector.load %arg2[%c0_9, %c2, %c0_10, %c0_11] : memref<1x3x4x128xf32, #tpu.memory_space<vmem>>, vector<1x1x4x128xf32>
    %8 = vector.shape_cast %7 : vector<1x1x4x128xf32> to vector<4x128xf32>
    %cst_12 = arith.constant dense<0.000000e+00> : vector<16x128xf32>
    %9 = tpu.matmul %0, %8, %cst_12 {dimension_numbers = #tpu.dot_dimension_numbers<[1], [0], [0], [1], [0, 0, 1, 1], [], []>} : vector<16x4xf32>, vector<4x128xf32>, vector<16x128xf32> -> vector<16x128xf32>
    %10 = vector.extract_strided_slice %3 {offsets = [0, 0], sizes = [8, 128], strides = [1, 1]} : vector<16x128xf32> to vector<8x128xf32>
    %11 = vector.extract_strided_slice %3 {offsets = [8, 0], sizes = [8, 128], strides = [1, 1]} : vector<16x128xf32> to vector<8x128xf32>
    %12 = vector.extract_strided_slice %6 {offsets = [0, 0], sizes = [8, 128], strides = [1, 1]} : vector<16x128xf32> to vector<8x128xf32>
    %13 = vector.extract_strided_slice %6 {offsets = [8, 0], sizes = [8, 128], strides = [1, 1]} : vector<16x128xf32> to vector<8x128xf32>
    %14 = vector.extract_strided_slice %9 {offsets = [0, 0], sizes = [8, 128], strides = [1, 1]} : vector<16x128xf32> to vector<8x128xf32>
    %15 = vector.extract_strided_slice %9 {offsets = [8, 0], sizes = [8, 128], strides = [1, 1]} : vector<16x128xf32> to vector<8x128xf32>
    %16 = arith.mulf %10, %11 : vector<8x128xf32>
    %17 = arith.mulf %12, %13 : vector<8x128xf32>
    %18 = arith.addf %16, %17 : vector<8x128xf32>
    %19 = arith.mulf %14, %15 : vector<8x128xf32>
    %20 = arith.addf %18, %19 : vector<8x128xf32>
    %21 = arith.mulf %11, %11 : vector<8x128xf32>
    %22 = arith.mulf %13, %13 : vector<8x128xf32>
    %23 = arith.addf %21, %22 : vector<8x128xf32>
    %24 = arith.mulf %15, %15 : vector<8x128xf32>
    %25 = arith.addf %23, %24 : vector<8x128xf32>
    %cst_13 = arith.constant 9.99999996E-13 : f32
    %26 = vector.broadcast %cst_13 : f32 to vector<8x128xf32>
    %27 = arith.addf %25, %26 : vector<8x128xf32>
    %28 = tpu.reciprocal %27 : vector<8x128xf32> -> vector<8x128xf32>
    %cst_14 = arith.constant 0.000000e+00 : f32
    %29 = vector.broadcast %cst_14 : f32 to vector<8x128xf32>
    %30 = arith.cmpf oge, %20, %29 : vector<8x128xf32>
    %31 = arith.mulf %20, %28 : vector<8x128xf32>
    %cst_15 = arith.constant 8.000000e-01 : f32
    %32 = vector.broadcast %cst_15 : f32 to vector<8x128xf32>
    %33 = arith.mulf %32, %31 : vector<8x128xf32>
    %cst_16 = arith.constant 0.000000e+00 : f32
    %34 = vector.broadcast %cst_16 : f32 to vector<8x128xf32>
    %35 = arith.select %30, %34, %33 : vector<8x128xi1>, vector<8x128xf32>
    %36 = arith.mulf %35, %11 : vector<8x128xf32>
    %37 = arith.subf %10, %36 : vector<8x128xf32>
    %c0_17 = arith.constant 0 : index
    %c0_18 = arith.constant 0 : index
    %c0_19 = arith.constant 0 : index
    %c0_20 = arith.constant 0 : index
    %38 = vector.load %arg4[%c0_17, %c0_18, %c0_19, %c0_20] : memref<1x3x8x128xf32, #tpu.memory_space<vmem>>, vector<1x1x8x128xf32>
    %39 = vector.shape_cast %38 : vector<1x1x8x128xf32> to vector<8x128xf32>
    %40 = vector.shape_cast %37 : vector<8x128xf32> to vector<1x1x8x128xf32>
    tpu.vector_store %arg4[%c0_17, %c0_18, %c0_19, %c0_20], %40 {strides = array<i32>} : memref<1x3x8x128xf32, #tpu.memory_space<vmem>>, vector<1x1x8x128xf32>,
    %41 = arith.mulf %35, %13 : vector<8x128xf32>
    %42 = arith.subf %12, %41 : vector<8x128xf32>
    %c0_21 = arith.constant 0 : index
    %c1_22 = arith.constant 1 : index
    %c0_23 = arith.constant 0 : index
    %c0_24 = arith.constant 0 : index
    %43 = vector.load %arg4[%c0_21, %c1_22, %c0_23, %c0_24] : memref<1x3x8x128xf32, #tpu.memory_space<vmem>>, vector<1x1x8x128xf32>
    %44 = vector.shape_cast %43 : vector<1x1x8x128xf32> to vector<8x128xf32>
    %45 = vector.shape_cast %42 : vector<8x128xf32> to vector<1x1x8x128xf32>
    tpu.vector_store %arg4[%c0_21, %c1_22, %c0_23, %c0_24], %45 {strides = array<i32>} : memref<1x3x8x128xf32, #tpu.memory_space<vmem>>, vector<1x1x8x128xf32>,
    %46 = arith.mulf %35, %15 : vector<8x128xf32>
    %47 = arith.subf %14, %46 : vector<8x128xf32>
    %c0_25 = arith.constant 0 : index
    %c2_26 = arith.constant 2 : index
    %c0_27 = arith.constant 0 : index
    %c0_28 = arith.constant 0 : index
    %48 = vector.load %arg4[%c0_25, %c2_26, %c0_27, %c0_28] : memref<1x3x8x128xf32, #tpu.memory_space<vmem>>, vector<1x1x8x128xf32>
    %49 = vector.shape_cast %48 : vector<1x1x8x128xf32> to vector<8x128xf32>
    %50 = vector.shape_cast %47 : vector<8x128xf32> to vector<1x1x8x128xf32>
    tpu.vector_store %arg4[%c0_25, %c2_26, %c0_27, %c0_28], %50 {strides = array<i32>} : memref<1x3x8x128xf32, #tpu.memory_space<vmem>>, vector<1x1x8x128xf32>,
    return
  }
  func.func @transform_0(%arg0: i32, %arg1: i32) -> (i32, i32, i32, i32) {
    %c0_i32 = arith.constant 0 : i32
    %c0_i32_0 = arith.constant 0 : i32
    %c0_i32_1 = arith.constant 0 : i32
    return %arg0, %c0_i32, %c0_i32_0, %arg1 : i32, i32, i32, i32
  }
  func.func @transform_1(%arg0: i32, %arg1: i32) -> (i32, i32) {
    %c0_i32 = arith.constant 0 : i32
    %c0_i32_0 = arith.constant 0 : i32
    %c0_i32_1 = arith.constant 0 : i32
    return %c0_i32, %c0_i32_0 : i32, i32
  }
  func.func @transform_2(%arg0: i32, %arg1: i32) -> (i32, i32, i32, i32) {
    %c0_i32 = arith.constant 0 : i32
    %c0_i32_0 = arith.constant 0 : i32
    %c0_i32_1 = arith.constant 0 : i32
    return %arg0, %c0_i32, %c0_i32_0, %arg1 : i32, i32, i32, i32
  }
}

</mosaic_0001>

<bundles_post_ra>
// kernel: tpu_custom_call.1
= control target key start
LH: loop header
LB: loop body
LE: loop exit
PB: predicated region body
PF: predicated region fallthrough
CT: control target
= control target key end

     0   :  { %7 = vsyncpa [#allocation3], 0  ;;  %s1003_s0 = inlined_call_operand.hbm [shape: f32[2,3,4,128], index: 0, kind: input, shape index: {}]   ;;  %s1004_s1 = inlined_call_operand.vmem [shape: f32[16,4], index: 1, kind: input, shape index: {}]   ;;  %s1005_s2 = inlined_call_operand.hbm [shape: f32[2,3,8,128], index: 2, kind: output, shape index: {}]  }
   0x1   :  { %9 = vsyncpa [#allocation3 + $0x1], 0 }
   0x2   :  { %10 = vsyncpa [#allocation4], 0 }
   0x3   :  { %12 = vsyncpa [#allocation4 + $0x1], 0  ;;  %s809_s9 = smov 0   ;;  %s811_s10 = smov 0  }
   0x4   :  { %s813_s11 = smov 0   ;;  %s815_s12 = smov 0  }
   0x5   :  { %s817_s13 = smov 0   ;;  %s819_s14 = smov 0  }
   0x6 LB: > { %s555_s15 = sadd.s32 4294967295, %s786_s14   ;;  %s556_s16 = sadd.s32 4294967294, %s786_s14   ;;  %s786_s14 = sphi %s819_s14, %s18_s14   ;;  %s782_s13 = sphi %s817_s13, %s1020_s13   ;;  %s778_s12 = sphi %s815_s12, %s1019_s12   ;;  %s774_s11 = sphi %s813_s11, %s1018_s11   ;;  %s770_s10 = sphi %s811_s10, %s1017_s10   ;;  %s766_s9 = sphi %s809_s9, %s1016_s9  }
   0x7   : > { %s30_s17 = sadd.s32 1, %s782_s13  ;;  %s39_s18 = sadd.s32 1, %s774_s11 }
   0x8   : > { %p32_p0 = scmp.ge.s32.totalorder %s30_s17, 2  ;;  %p46_p1 = scmp.ne.s32.totalorder %s774_s11, %s770_s10 }
   0x9   : > { %p47_p2 = scmp.eq.s32.totalorder %s786_s14, 0  ;;  %p52_p3 = scmp.ne.s32.totalorder %s770_s10, %s766_s9 }
   0xa   : > { %s1022_s17 = smov (%p32_p0, %s30_s17), 0  ;;  %p53_p5 = scmp.eq.s32.totalorder %s555_s15, 0 }
   0xb   : > { %p850_p4 = por %p47_p2, %p46_p1  ;;  %s34_s20 = ssub.s32 %s782_s13, %s1022_s17 }
   0xc   : > { %p99_p6 = scmp.eq.s32.totalorder %s555_s15, 1  ;;  %p37_p7 = scmp.eq.s32.totalorder %s34_s20, 0 }
   0xd   : > { %p856_p8 = por %p53_p5, %p52_p3  ;;  %p105_p10 = scmp.eq.s32.totalorder %s556_s16, 1 }
   0xe   : > { %p860_p9 = por %p99_p6, %p46_p1  ;;  %p618_p13 = scmp.lt.s32.totalorder %s786_s14, 2 }
   0xf   : > { %s865_s23 = scalar_select %p37_p7, %s774_s11, %s39_s18  }
  0x10   : > { %s1009_s22 = scalar_select %p860_p9, 1, 0 }
  0x11   : > { %p867_p11 = por %p105_p10, %p52_p3  ;;  %s128_s25 = sand.u32 1, %s774_s11  }
  0x12   : > { %s601_s26 = smul.u32 12, %s128_s25  ;;  %p877_p0 = pnand %p618_p13, %p850_p4 }
  0x13   : > { %s1010_s24 = scalar_select %p867_p11, 1, 0 }
  0x14   : > { %s602_s27 = smul.u32 192, %s782_s13  ;;  %s132_s4 = scalar_lea.vmem [#allocation2], %s601_s26 }
  0x15   : > { %s140_s5 = sshll.u32 %s132_s4, 4  ;;  %s889_s6 = scalar_lea.sflag [#allocation3], %s128_s25  ;;  %s886_s5 = int_to_ptr.vmem [resolvable:$true] %s140_s5 }
  0x16   : > { %s884_s3 = scalar_lea.hbm %s1003_s0, %s602_s27  ;;  %p676_p3 = pneg %p877_p0 }
  0x17   : > { %s674_s7 = scalar_lea.hbm %s884_s3, 192  ;;  %s679_s16 = scalar_lea.hbm %s1003_s0, 384 }
  0x18   : > { %p675_p2 = scmp.ne.s32.totalorder %s884_s3, %s674_s7  ;;  %p680_p6 = scmp.lt.u32.totalorder %s884_s3, %s1003_s0 }
  0x19   : > { %p681_p7 = scmp.lt.u32.totalorder %s679_s16, %s674_s7  ;;  %p683_p13 = scmp.lt.u32.totalorder %s674_s7, %s884_s3 }
  0x1a   : > { %p677_p4 = pnand %p676_p3, %p675_p2 }
  0x1b   : > { %p682_p10 = por %p681_p7, %p680_p6 }
  0x1c   : > { %p678_p5 = pneg %p677_p4 }
  0x1d   : > { %p684_p12 = por %p683_p13, %p682_p10 }
  0x1f   : > { %p685_p1 = pnand %p684_p12, %p678_p5 }
  0x21   : > { %688 = shalt.err (!%p685_p1)
}
  0x22   : > { %s689_s20 = scalar_lea.vmem %s886_s5, 192  ;;  %s788_s25 = smov [#allocation2]  }
  0x23   : > { %p690_p2 = scmp.ne.s32.totalorder %s886_s5, %s689_s20  ;;  %s694_s26 = sshll.u32 %s788_s25, 4  ;;  %s695_s26 = int_to_ptr.vmem [resolvable:$false] %s694_s26 }
  0x24   : > { %s696_s27 = scalar_lea.vmem %s695_s26, 384  ;;  %p697_p9 = scmp.lt.s32.totalorder %s886_s5, %s695_s26 }
  0x25   : > { %p692_p4 = pnand %p690_p2, %p676_p3  ;;  %p698_p6 = scmp.lt.s32.totalorder %s696_s27, %s689_s20 }
  0x27   : > { %p693_p11 = pneg %p692_p4  ;;  %p699_p7 = por %p698_p6, %p697_p9 }
  0x29   : > { %p700_p10 = pnand %p699_p7, %p693_p11 }
  0x2b   : > { %703 = shalt.err (!%p700_p10)
}
  0x2c   : > { %s789_s29 = smov 64   ;;  %s790_s30 = smov 4  }
  0x2d   : > { %613 = dma.hbm_to_vmem [thread:$0]  (!%p877_p0), %s884_s3, 192, %s886_s5, %s889_s6, %s789_s29, %s789_s29, %s790_s30  }
  0x2e   : > { %p148_p12 = scmp.lt.s32.totalorder %s786_s14, 3  ;;  %p1012_p1 = scmp.ge.s32.totalorder %s786_s14, 1 }
  0x30   : > { %p149_p3 = pnand %p1012_p1, %p148_p12 }
  0x31   : > { %s921_s4 = sand.u32 (!%p149_p3), 1, %s770_s10  }
  0x32   : > { %152 = sbr.rel (%p149_p3) target bundleno = 320 (0x140), region = 28  ;;  %s155_s8 = scalar_lea.sflag (!%p149_p3), [#allocation3], %s921_s4 }
  0x33   : > { %s603_s7 = smul.u32 (!%p149_p3), 12, %s921_s4 }
  0x35   : > { %s158_s15 = scalar_lea.vmem (!%p149_p3), [#allocation2], %s603_s7 }
  0x39   : > { %757 = dma.done.wait (%p856_p8), %s155_s8, 192  }
  0x3a   : > { %759 = vsyncadd (%p856_p8), %s155_s8, 4294967104  ;;  %vm189_vm0 = vcmask 1043456   ;;  %vm182_vm1 = vcmask 31744   ;;  %v181_v0 = vld [vmem:[%s158_s15] sm:$0xf]  ;;  %s604_s21 = smul.u32 24, %s921_s4 }
  0x3b   : > { %v564_v1 = vld [vmem:[%s158_s15 + $0x4] sm:$0xf]  ;;  %586 = vmatprep.subr.msk.mxu0 %vm189_vm0, %v181_v0  ;;  %v180_v3 = vld [vmem:[%s1004_s1 + $0x8] sm:$0xff]  ;;  %s605_s19 = smul.u32 384, %s778_s12  ;;  %s456_s12 = scalar_lea.sflag [#allocation4], %s921_s4 }
  0x3c   : > { %v179_v2 = vld [vmem:[%s1004_s1] sm:$0xff]  ;;  %591 = vmatprep.subr.msk.mxu1 %vm189_vm0, %v564_v1  ;;  %587 = vmatpush3.msk.msra.mxu0 %vm189_vm0, %v181_v0  ;;  %v568_v4 = vld [vmem:[%s158_s15 + $0x8] sm:$0xf]  ;;  %s178_s16 = scalar_lea.vmem [#allocation5], %s604_s21  ;;  %p1013_p9 = scmp.ne.s32.totalorder %s1009_s22, 0 }
  0x3d   : > { %588 = vmatprep.mubr.msk.f32.mxu0 %vm182_vm1, %v179_v2  ;;  %592 = vmatpush3.msk.msra.mxu1 %vm189_vm0, %v564_v1  ;;  %s470_s18 = sshll.u32 %s178_s16, 4  ;;  %s954_s26 = scalar_lea.hbm %s1005_s2, %s605_s19  ;;  %s949_s18 = int_to_ptr.vmem [resolvable:$true] %s470_s18 }
  0x3e   : > { %593 = vmatprep.mubr.msk.f32.mxu1 %vm182_vm1, %v179_v2  ;;  %589 = vmatmul.mubr.msk.f32.vlgmr.msra.gmra.mrb[0].mxu0 %vm182_vm1, %v180_v3  ;;  %s704_s27 = scalar_lea.vmem %s949_s18, 384  ;;  %s791_s29 = smov [#allocation5]  }
  0x3f   : > { %594 = vmatmul.mubr.msk.f32.vlgmr.msra.gmra.mrb[0].mxu1 %vm182_vm1, %v180_v3  ;;  %596 = vmatprep.subr.msk.mxu0 %vm189_vm0, %v568_v4  ;;  %p705_p8 = scmp.ne.s32.totalorder %s949_s18, %s704_s27  ;;  %s708_s30 = sshll.u32 %s791_s29, 4  ;;  %s709_s30 = int_to_ptr.vmem [resolvable:$false] %s708_s30 }
  0x40   : > { %598 = vmatprep.mubr.msk.f32.mxu0 %vm182_vm1, %v179_v2  ;;  %597 = vmatpush3.msk.msra.mxu0 %vm189_vm0, %v568_v4  ;;  %s710_s7 = scalar_lea.vmem %s709_s30, 768  ;;  %p711_p5 = scmp.lt.s32.totalorder %s949_s18, %s709_s30 }
  0x41   : > { %p706_p11 = pnand %p705_p8, %p1013_p9  ;;  %p712_p13 = scmp.lt.s32.totalorder %s710_s7, %s704_s27 }
  0x42   : > { %599 = vmatmul.mubr.msk.f32.vlgmr.msra.gmra.mrb[2].mxu0 %vm182_vm1, %v180_v3 }
  0x43   : > { %p707_p0 = pneg %p706_p11  ;;  %p713_p2 = por %p712_p13, %p711_p5 }
  0x45   : > { %p714_p4 = pnand %p713_p2, %p707_p0 }
 0x111   : > { %v590_v5 = vpop.f32.mrb[0].mxu0 }
 0x112   : > { %v595_v6 = vpop.f32.mrb[0].mxu1  ;;  %v433_v7 = vmul.f32 %v590_v5, %v590_v5  ;;  %v259_v9 = vpop.f32.mrb[1].mxu0 }
 0x113   : > { %v434_v8 = vmul.f32 %v595_v6, %v595_v6  ;;  %v339_v10 = vpop.f32.mrb[1].mxu1  ;;  %v428_v11 = vmul.f32 %v590_v5, %v259_v9 }
 0x114   : > { %v429_v12 = vmul.f32 %v595_v6, %v339_v10 }
 0x115   : > { %v435_v13 = vadd.f32 %v434_v8, %v433_v7  ;;  %v600_v15 = vpop.f32.mrb[2].mxu0 }
 0x116   : > { %v430_v14 = vadd.f32 %v429_v12, %v428_v11  ;;  %v436_v16 = vmul.f32 %v600_v15, %v600_v15  ;;  %v419_v17 = vpop.f32.mrb[3].mxu0 }
 0x117   : > { %v431_v18 = vmul.f32 %v600_v15, %v419_v17 }
 0x118   : > { %v437_v19 = vadd.f32 %v436_v16, %v435_v13 }
 0x119   : > { %v432_v20 = vadd.f32 %v431_v18, %v430_v14 }
 0x11a   : > { %v438_v21 = vadd.f32 1e-12, %v437_v19 }
 0x11b   : > { %vm440_vm2 = vcmp.ge.f32.partialorder %v432_v20, 0.0 }
 0x11c   : > { %672 = vrcp.f32 %v438_v21 }
 0x126   : > { %v673_v22 = vpop.eup %672 }
 0x127   : > { %v441_v23 = vmul.f32 %v673_v22, %v432_v20 }
 0x129   : > { %v442_v24 = vmul.f32 0.8, %v441_v23 }
 0x12b   : > { %v443_v25 = vsel %vm440_vm2, 0.0, %v442_v24 }
 0x12c   : > { %v444_v26 = vmul.f32 %v590_v5, %v443_v25  ;;  %v447_v27 = vmul.f32 %v595_v6, %v443_v25  ;;  %v451_v28 = vmul.f32 %v600_v15, %v443_v25 }
 0x12e   : > { %v445_v29 = vsub.f32 %v259_v9, %v444_v26  ;;  %v448_v30 = vsub.f32 %v339_v10, %v447_v27  ;;  %v452_v31 = vsub.f32 %v419_v17, %v451_v28 }
 0x130   : > { %446 = vst [vmem:[%s178_s16] sm:$0xff] %v445_v29  ;;  %572 = vst [vmem:[%s178_s16 + $0x8] sm:$0xff] %v448_v30 }
 0x131   : > { %573 = vst [vmem:[%s178_s16 + $0x10] sm:$0xff] %v452_v31 }
 0x132   : > { %717 = shalt.err (!%p714_p4)
}
 0x133   : > { %s718_s8 = scalar_lea.hbm %s954_s26, 384  ;;  %s722_s3 = scalar_lea.hbm %s1005_s2, 768 }
 0x134   : > { %p719_p6 = scmp.ne.s32.totalorder %s954_s26, %s718_s8  ;;  %p723_p12 = scmp.lt.u32.totalorder %s954_s26, %s1005_s2 }
 0x135   : > { %p724_p1 = scmp.lt.u32.totalorder %s722_s3, %s718_s8  ;;  %p726_p8 = scmp.lt.u32.totalorder %s718_s8, %s954_s26 }
 0x136   : > { %p720_p7 = pnand %p719_p6, %p1013_p9 }
 0x137   : > { %p725_p3 = por %p724_p1, %p723_p12 }
 0x138   : > { %p721_p10 = pneg %p720_p7 }
 0x139   : > { %p727_p11 = por %p726_p8, %p725_p3 }
 0x13b   : > { %p728_p0 = pnand %p727_p11, %p721_p10 }
 0x13d   : > { %731 = shalt.err (!%p728_p0)
}
 0x13e   : > { %s792_s21 = smov 128   ;;  %s793_s16 = smov 8  }
 0x13f   : > { %608 = dma.vmem_to_hbm [thread:$0]  (%p1013_p9), %s949_s18, 384, %s954_s26, %s456_s12, %s792_s21, %s792_s21, %s793_s16  }
 0x140 PF: > { %s485_s19 = sand.u32 1, %s766_s9   ;;  %p1014_p5 = scmp.ne.s32.totalorder %s1010_s24, 0 }
 0x141   : > { %p1015_p13 = scmp.ge.s32.totalorder %s786_s14, 2  ;;  %s486_s20 = scalar_lea.sflag [#allocation4], %s485_s19 }
 0x143   : > { %p615_p2 = pnand %p1015_p13, %p1014_p5 }
 0x145   : > { %761 = dma.done.wait (!%p615_p2), %s486_s20, 384  }
 0x146   : > { %763 = vsyncadd (!%p615_p2), %s486_s20, 4294966912  ;;  %s18_s14 = sadd.s32 1, %s786_s14   ;;  %s1016_s9 = smov %s770_s10 }
 0x147   : > { %p15_p4 = scmp.ge.s32.totalorder %s18_s14, 4   ;;  %s1017_s10 = smov %s774_s11 }
 0x148   : > { %s1018_s11 = smov %s865_s23  ;;  %s1019_s12 = smov %s782_s13 }
 0x149   : > { %s1020_s13 = smov %s1022_s17  ;;  %17 = sbr.rel (!%p15_p4) target bundleno = 6 (0x6), region = 77 }
 0x150   :  { %491 = vsyncpa [#allocation3], 1 }
 0x151   :  { %493 = vsyncpa [#allocation3 + $0x1], 1 }
 0x152   :  { %494 = vsyncpa [#allocation4], 1 }
 0x153   :  { %496 = vsyncpa [#allocation4 + $0x1], 1 }

</bundles_post_ra>
